<compile_context>
chip_gen: v7x
topology: tpu7x:2x2x1
jax: 0.10.0
libtpu: 0.0.40
codegen_flags: <defaults>
</compile_context>

<pallas_src>
import functools

import jax
import jax.numpy as jnp
from jax.experimental import pallas as pl
from jax.experimental.pallas import tpu as pltpu


def _distributional_kernel(x_ref, w1_ref, b1_ref, w2_ref, b2_ref,
                           w3_ref, b3_ref, g_ref, gt_ref, out_ref,
                           *, output_dim, num_atoms):
    x = x_ref[...]

    # fc1 + ReLU  (f32 accumulation on the MXU; bias/ReLU in f32, then narrow)
    h1 = jnp.dot(x, w1_ref[...], preferred_element_type=jnp.float32) + b1_ref[...]
    h1 = jnp.maximum(h1, 0.0).astype(w2_ref.dtype)

    # fc2 + ReLU
    h2 = jnp.dot(h1, w2_ref[...], preferred_element_type=jnp.float32) + b2_ref[...]
    h2 = jnp.maximum(h2, 0.0).astype(w3_ref.dtype)

    # fc3 -> logits over output_dim * num_atoms, kept 2D / lane-dense
    logits = jnp.dot(h2, w3_ref[...], preferred_element_type=jnp.float32) + b3_ref[...]

    tb = logits.shape[0]

    # Per-group (per-action) max: only this touches the 3D view.
    m2 = jnp.max(logits.reshape(tb, output_dim, num_atoms), axis=-1)    # (tb, A)
    m_bcast = jnp.dot(m2, gt_ref[...], preferred_element_type=jnp.float32)

    # Lane-dense exp; group sums & broadcast of the reciprocal via tiny
    # block-diagonal indicator matmuls (no lane relayout, spare MXU slot).
    e = jnp.exp(logits - m_bcast)                                       # (tb, O)
    s = jnp.dot(e, g_ref[...], preferred_element_type=jnp.float32)      # (tb, A)
    inv = 1.0 / s                                      # exact -> rows sum to 1
    p = e * jnp.dot(inv, gt_ref[...], preferred_element_type=jnp.float32)

    out_ref[...] = p.astype(out_ref.dtype)


def _plan_batch(batch, max_block_batch, row_bytes):
    """Pick (batch_tile, padded_batch): large tiles, even #steps, no ragged tile."""
    vmem_budget = 8 * 1024 * 1024        # per-step activation / IO working set
    cap = min(int(max_block_batch), max(256, vmem_budget // max(int(row_bytes), 1)))
    cap = max(8, (cap // 8) * 8)
    if batch <= min(cap, 511):           # small batch: one full-array tile
        return batch, batch
    steps = max(2, pl.cdiv(batch, cap))
    if steps % 2:                        # even split across v7x's two TensorCores
        steps += 1
    tb = ((pl.cdiv(batch, steps) + 7) // 8) * 8
    return tb, tb * steps


def distributional_net(x, w1, b1, w2, b2, w3, b3, *, output_dim, num_atoms,
                       compute_dtype=jnp.bfloat16, out_dtype=jnp.float32,
                       max_block_batch=4096):
    """x: (B, input_dim); w*: (in, out) pre-transposed; b*: (1, out) float32.

    Returns (B, output_dim, num_atoms) probabilities (softmax over atoms).
    """
    batch, input_dim = x.shape
    hidden_dim = w1.shape[1]
    out_feat = output_dim * num_atoms
    assert w3.shape[1] == out_feat

    # Optionally narrow activations/weights (NOT biases): cheaper DMA + native MXU rate.
    if compute_dtype != jnp.float32:
        x = x.astype(compute_dtype)
        w1 = w1.astype(compute_dtype)
        w2 = w2.astype(compute_dtype)
        w3 = w3.astype(compute_dtype)

    itemsize = jnp.dtype(compute_dtype).itemsize
    out_isz = jnp.dtype(out_dtype).itemsize
    row_bytes = (2 * input_dim * itemsize        # x (double-buffered)
                 + 2 * hidden_dim * 4            # h1 / h2 intermediates (f32)
                 + 4 * out_feat * 4              # logits / exp / broadcasts (f32)
                 + 2 * out_feat * out_isz)       # output (double-buffered)
    tb, padded = _plan_batch(batch, max_block_batch, row_bytes)
    if padded != batch:
        x = jnp.pad(x, ((0, padded - batch), (0, 0)))
    grid = (padded // tb,)

    # Block-diagonal group-indicator matrices for the lane-dense softmax epilogue.
    groups = jnp.arange(out_feat, dtype=jnp.int32) // num_atoms
    g = (groups[:, None] == jnp.arange(output_dim, dtype=jnp.int32)[None, :]
         ).astype(jnp.float32)                   # (out_feat, output_dim)
    gt = g.T                                     # (output_dim, out_feat)

    kernel = functools.partial(_distributional_kernel,
                               output_dim=output_dim, num_atoms=num_atoms)

    def _resident(arr):
        # VMEM-resident across the whole grid: constant index_map + single buffer.
        return pl.BlockSpec(arr.shape, lambda i: (0, 0),
                            pipeline_mode=pl.Buffered(1))

    in_specs = [
        pl.BlockSpec((tb, input_dim), lambda i: (i, 0)),   # x: tiled on batch
        _resident(w1), _resident(b1),
        _resident(w2), _resident(b2),
        _resident(w3), _resident(b3),
        _resident(g), _resident(gt),
    ]
    out_specs = pl.BlockSpec((tb, out_feat), lambda i: (i, 0))   # lane-dense 2D

    flops = 2 * padded * (input_dim * hidden_dim
                          + hidden_dim * hidden_dim
                          + hidden_dim * out_feat
                          + 3 * output_dim * out_feat)           # + epilogue matmuls
    transcendentals = padded * out_feat                          # exp
    bytes_accessed = (padded * input_dim * itemsize              # x
                      + (input_dim + hidden_dim) * hidden_dim * itemsize
                      + hidden_dim * out_feat * itemsize         # weights
                      + (2 * hidden_dim + out_feat) * 4          # biases (f32)
                      + 2 * output_dim * out_feat * 4            # indicators
                      + padded * out_feat * out_isz)             # output

    out2d = pl.pallas_call(
        kernel,
        out_shape=jax.ShapeDtypeStruct((padded, out_feat), out_dtype),
        grid_spec=pltpu.PrefetchScalarGridSpec(
            num_scalar_prefetch=0,
            grid=grid,
            in_specs=in_specs,
            out_specs=out_specs,
        ),
        compiler_params=pltpu.CompilerParams(
            dimension_semantics=("parallel",),
            vmem_limit_bytes=48 * 1024 * 1024,
        ),
        cost_estimate=pl.CostEstimate(
            flops=flops,
            transcendentals=transcendentals,
            bytes_accessed=bytes_accessed,
        ),
    )(x, w1, b1, w2, b2, w3, b3, g, gt)

    if padded != batch:
        out2d = out2d[:batch]
    # Free layout plumbing (matches torch's x.view(-1, output_dim, num_atoms)).
    return out2d.reshape(batch, output_dim, num_atoms)


def _reference(x, w1, b1, w2, b2, w3, b3, output_dim, num_atoms):
    h1 = jnp.maximum(x @ w1 + b1, 0.0)
    h2 = jnp.maximum(h1 @ w2 + b2, 0.0)
    logits = h2 @ w3 + b3
    z = logits.reshape(-1, output_dim, num_atoms)
    return jax.nn.softmax(z, axis=2)


if __name__ == "__main__":
    # Small, forward-consistent shapes (DistributionalNet demo sizes).
    batch = 2
    input_dim = 16
    hidden_dim = 32
    output_dim = 4
    num_atoms = 8

    key = jax.random.PRNGKey(0)
    keys = jax.random.split(key, 7)

    # Deterministic synthetic parameters (stored as (in, out) for the kernel).
    w1 = jax.random.normal(keys[0], (input_dim, hidden_dim), jnp.float32) * 0.1
    b1 = jax.random.normal(keys[1], (1, hidden_dim), jnp.float32) * 0.1
    w2 = jax.random.normal(keys[2], (hidden_dim, hidden_dim), jnp.float32) * 0.1
    b2 = jax.random.normal(keys[3], (1, hidden_dim), jnp.float32) * 0.1
    w3 = jax.random.normal(keys[4], (hidden_dim, output_dim * num_atoms), jnp.float32) * 0.1
    b3 = jax.random.normal(keys[5], (1, output_dim * num_atoms), jnp.float32) * 0.1

    x = jax.random.normal(keys[6], (batch, input_dim), jnp.float32)

    # --- f32 path (demo shapes, single grid step) ---
    out = distributional_net(x, w1, b1, w2, b2, w3, b3,
                             output_dim=output_dim, num_atoms=num_atoms,
                             compute_dtype=jnp.float32)
    out = jax.block_until_ready(out)
    ref = _reference(x, w1, b1, w2, b2, w3, b3, output_dim, num_atoms)
    assert out.shape == (batch, output_dim, num_atoms)
    assert jnp.allclose(out, ref, atol=2e-3, rtol=2e-3)
    # Exact in-kernel normalization -> rows sum to 1 to f32 rounding.
    assert jnp.allclose(jnp.sum(out, axis=-1), 1.0, atol=1e-3)

    # --- larger batch: even 2-step grid (tb=520) for the v7x megacore split ---
    big_batch = 1040
    xb = jax.random.normal(jax.random.PRNGKey(1), (big_batch, input_dim), jnp.float32)
    out_big = distributional_net(xb, w1, b1, w2, b2, w3, b3,
                                 output_dim=output_dim, num_atoms=num_atoms,
                                 compute_dtype=jnp.float32)
    out_big = jax.block_until_ready(out_big)
    ref_big = _reference(xb, w1, b1, w2, b2, w3, b3, output_dim, num_atoms)
    assert out_big.shape == (big_batch, output_dim, num_atoms)
    assert jnp.allclose(out_big, ref_big, atol=2e-3, rtol=2e-3)
    assert jnp.allclose(jnp.sum(out_big, axis=-1), 1.0, atol=1e-3)

    # --- default bf16-compute path (f32 accumulation, exact normalization) ---
    out_bf16 = distributional_net(xb, w1, b1, w2, b2, w3, b3,
                                  output_dim=output_dim, num_atoms=num_atoms)
    out_bf16 = jax.block_until_ready(out_bf16)
    assert jnp.allclose(out_bf16, ref_big, atol=2e-2, rtol=2e-2)
    assert jnp.allclose(jnp.sum(out_bf16, axis=-1), 1.0, atol=1e-3)

    # --- bf16 output (halves the dominant output HBM stream) ---
    out_b16o = distributional_net(xb, w1, b1, w2, b2, w3, b3,
                                  output_dim=output_dim, num_atoms=num_atoms,
                                  out_dtype=jnp.bfloat16)
    out_b16o = jax.block_until_ready(out_b16o)
    assert out_b16o.dtype == jnp.bfloat16
    assert jnp.allclose(out_b16o.astype(jnp.float32), ref_big, atol=3e-2, rtol=3e-2)
    assert jnp.allclose(jnp.sum(out_b16o.astype(jnp.float32), axis=-1), 1.0, atol=5e-2)

    print("KERNEL_OK")
</pallas_src>

<mosaic_0001>
module attributes {stable_mosaic.version = 11 : i64} {
  func.func @_distributional_kernel(%arg0: i32, %arg1: memref<2x16xf32, #tpu.memory_space<vmem>>, %arg2: memref<16x32xf32, #tpu.memory_space<vmem>>, %arg3: memref<1x32xf32, #tpu.memory_space<vmem>>, %arg4: memref<32x32xf32, #tpu.memory_space<vmem>>, %arg5: memref<1x32xf32, #tpu.memory_space<vmem>>, %arg6: memref<32x32xf32, #tpu.memory_space<vmem>>, %arg7: memref<1x32xf32, #tpu.memory_space<vmem>>, %arg8: memref<32x4xf32, #tpu.memory_space<vmem>>, %arg9: memref<4x32xf32, #tpu.memory_space<vmem>>, %arg10: memref<2x32xf32, #tpu.memory_space<vmem>>) attributes {dimension_semantics = [#tpu.dimension_semantics<parallel>], iteration_bounds = array<i64: 1>, scalar_prefetch = 0 : i64, scratch_operands = 0 : i64, tpu.core_type = #tpu.core_type<tc>, window_params = [{transform_indices = @transform_0, window_bounds = array<i64: 2, 16>}, {pipeline_mode = #tpu.pipeline_mode<synchronous>, transform_indices = @transform_1, window_bounds = array<i64: 16, 32>}, {pipeline_mode = #tpu.pipeline_mode<synchronous>, transform_indices = @transform_2, window_bounds = array<i64: 1, 32>}, {pipeline_mode = #tpu.pipeline_mode<synchronous>, transform_indices = @transform_3, window_bounds = array<i64: 32, 32>}, {pipeline_mode = #tpu.pipeline_mode<synchronous>, transform_indices = @transform_4, window_bounds = array<i64: 1, 32>}, {pipeline_mode = #tpu.pipeline_mode<synchronous>, transform_indices = @transform_5, window_bounds = array<i64: 32, 32>}, {pipeline_mode = #tpu.pipeline_mode<synchronous>, transform_indices = @transform_6, window_bounds = array<i64: 1, 32>}, {pipeline_mode = #tpu.pipeline_mode<synchronous>, transform_indices = @transform_7, window_bounds = array<i64: 32, 4>}, {pipeline_mode = #tpu.pipeline_mode<synchronous>, transform_indices = @transform_8, window_bounds = array<i64: 4, 32>}, {transform_indices = @transform_9, window_bounds = array<i64: 2, 32>}]} {
    %c0 = arith.constant 0 : index
    %c0_0 = arith.constant 0 : index
    %0 = vector.load %arg1[%c0, %c0_0] : memref<2x16xf32, #tpu.memory_space<vmem>>, vector<2x16xf32>
    %c0_1 = arith.constant 0 : index
    %c0_2 = arith.constant 0 : index
    %1 = vector.load %arg2[%c0_1, %c0_2] : memref<16x32xf32, #tpu.memory_space<vmem>>, vector<16x32xf32>
    %cst = arith.constant dense<0.000000e+00> : vector<2x32xf32>
    %2 = tpu.matmul %0, %1, %cst {dimension_numbers = #tpu.dot_dimension_numbers<[1], [0], [0], [1], [0, 0, 1, 1], [], []>} : vector<2x16xf32>, vector<16x32xf32>, vector<2x32xf32> -> vector<2x32xf32>
    %c0_3 = arith.constant 0 : index
    %c0_4 = arith.constant 0 : index
    %3 = vector.load %arg3[%c0_3, %c0_4] : memref<1x32xf32, #tpu.memory_space<vmem>>, vector<1x32xf32>
    %4 = vector.broadcast %3 : vector<1x32xf32> to vector<2x32xf32>
    %5 = arith.addf %2, %4 : vector<2x32xf32>
    %cst_5 = arith.constant 0.000000e+00 : f32
    %6 = vector.broadcast %cst_5 : f32 to vector<2x32xf32>
    %7 = arith.maximumf %5, %6 : vector<2x32xf32>
    %c0_6 = arith.constant 0 : index
    %c0_7 = arith.constant 0 : index
    %8 = vector.load %arg4[%c0_6, %c0_7] : memref<32x32xf32, #tpu.memory_space<vmem>>, vector<32x32xf32>
    %cst_8 = arith.constant dense<0.000000e+00> : vector<2x32xf32>
    %9 = tpu.matmul %7, %8, %cst_8 {dimension_numbers = #tpu.dot_dimension_numbers<[1], [0], [0], [1], [0, 0, 1, 1], [], []>} : vector<2x32xf32>, vector<32x32xf32>, vector<2x32xf32> -> vector<2x32xf32>
    %c0_9 = arith.constant 0 : index
    %c0_10 = arith.constant 0 : index
    %10 = vector.load %arg5[%c0_9, %c0_10] : memref<1x32xf32, #tpu.memory_space<vmem>>, vector<1x32xf32>
    %11 = vector.broadcast %10 : vector<1x32xf32> to vector<2x32xf32>
    %12 = arith.addf %9, %11 : vector<2x32xf32>
    %cst_11 = arith.constant 0.000000e+00 : f32
    %13 = vector.broadcast %cst_11 : f32 to vector<2x32xf32>
    %14 = arith.maximumf %12, %13 : vector<2x32xf32>
    %c0_12 = arith.constant 0 : index
    %c0_13 = arith.constant 0 : index
    %15 = vector.load %arg6[%c0_12, %c0_13] : memref<32x32xf32, #tpu.memory_space<vmem>>, vector<32x32xf32>
    %cst_14 = arith.constant dense<0.000000e+00> : vector<2x32xf32>
    %16 = tpu.matmul %14, %15, %cst_14 {dimension_numbers = #tpu.dot_dimension_numbers<[1], [0], [0], [1], [0, 0, 1, 1], [], []>} : vector<2x32xf32>, vector<32x32xf32>, vector<2x32xf32> -> vector<2x32xf32>
    %c0_15 = arith.constant 0 : index
    %c0_16 = arith.constant 0 : index
    %17 = vector.load %arg7[%c0_15, %c0_16] : memref<1x32xf32, #tpu.memory_space<vmem>>, vector<1x32xf32>
    %18 = vector.broadcast %17 : vector<1x32xf32> to vector<2x32xf32>
    %19 = arith.addf %16, %18 : vector<2x32xf32>
    %20 = vector.shape_cast %19 : vector<2x32xf32> to vector<2x4x8xf32>
    %cst_17 = arith.constant dense<0xFF800000> : vector<2x4xf32>
    %21 = vector.multi_reduction <maximumf>, %20, %cst_17 [2] : vector<2x4x8xf32> to vector<2x4xf32>
    %c0_18 = arith.constant 0 : index
    %c0_19 = arith.constant 0 : index
    %22 = vector.load %arg9[%c0_18, %c0_19] : memref<4x32xf32, #tpu.memory_space<vmem>>, vector<4x32xf32>
    %cst_20 = arith.constant dense<0.000000e+00> : vector<2x32xf32>
    %23 = tpu.matmul %21, %22, %cst_20 {dimension_numbers = #tpu.dot_dimension_numbers<[1], [0], [0], [1], [0, 0, 1, 1], [], []>} : vector<2x4xf32>, vector<4x32xf32>, vector<2x32xf32> -> vector<2x32xf32>
    %24 = arith.subf %19, %23 : vector<2x32xf32>
    %25 = math.exp %24 : vector<2x32xf32>
    %c0_21 = arith.constant 0 : index
    %c0_22 = arith.constant 0 : index
    %26 = vector.load %arg8[%c0_21, %c0_22] : memref<32x4xf32, #tpu.memory_space<vmem>>, vector<32x4xf32>
    %cst_23 = arith.constant dense<0.000000e+00> : vector<2x4xf32>
    %27 = tpu.matmul %25, %26, %cst_23 {dimension_numbers = #tpu.dot_dimension_numbers<[1], [0], [0], [1], [0, 0, 1, 1], [], []>} : vector<2x32xf32>, vector<32x4xf32>, vector<2x4xf32> -> vector<2x4xf32>
    %cst_24 = arith.constant 1.000000e+00 : f32
    %28 = vector.broadcast %cst_24 : f32 to vector<2x4xf32>
    %29 = arith.divf %28, %27 : vector<2x4xf32>
    %c0_25 = arith.constant 0 : index
    %c0_26 = arith.constant 0 : index
    %30 = vector.load %arg9[%c0_25, %c0_26] : memref<4x32xf32, #tpu.memory_space<vmem>>, vector<4x32xf32>
    %cst_27 = arith.constant dense<0.000000e+00> : vector<2x32xf32>
    %31 = tpu.matmul %29, %30, %cst_27 {dimension_numbers = #tpu.dot_dimension_numbers<[1], [0], [0], [1], [0, 0, 1, 1], [], []>} : vector<2x4xf32>, vector<4x32xf32>, vector<2x32xf32> -> vector<2x32xf32>
    %32 = arith.mulf %25, %31 : vector<2x32xf32>
    %c0_28 = arith.constant 0 : index
    %c0_29 = arith.constant 0 : index
    %33 = vector.load %arg10[%c0_28, %c0_29] : memref<2x32xf32, #tpu.memory_space<vmem>>, vector<2x32xf32>
    tpu.vector_store %arg10[%c0_28, %c0_29], %32 {strides = array<i32>} : memref<2x32xf32, #tpu.memory_space<vmem>>, vector<2x32xf32>,
    return
  }
  func.func @transform_0(%arg0: i32) -> (i32, i32) {
    %c0_i32 = arith.constant 0 : i32
    %c0_i32_0 = arith.constant 0 : i32
    return %arg0, %c0_i32 : i32, i32
  }
  func.func @transform_1(%arg0: i32) -> (i32, i32) {
    %c0_i32 = arith.constant 0 : i32
    %c0_i32_0 = arith.constant 0 : i32
    %c0_i32_1 = arith.constant 0 : i32
    return %c0_i32, %c0_i32_0 : i32, i32
  }
  func.func @transform_2(%arg0: i32) -> (i32, i32) {
    %c0_i32 = arith.constant 0 : i32
    %c0_i32_0 = arith.constant 0 : i32
    %c0_i32_1 = arith.constant 0 : i32
    return %c0_i32, %c0_i32_0 : i32, i32
  }
  func.func @transform_3(%arg0: i32) -> (i32, i32) {
    %c0_i32 = arith.constant 0 : i32
    %c0_i32_0 = arith.constant 0 : i32
    %c0_i32_1 = arith.constant 0 : i32
    return %c0_i32, %c0_i32_0 : i32, i32
  }
  func.func @transform_4(%arg0: i32) -> (i32, i32) {
    %c0_i32 = arith.constant 0 : i32
    %c0_i32_0 = arith.constant 0 : i32
    %c0_i32_1 = arith.constant 0 : i32
    return %c0_i32, %c0_i32_0 : i32, i32
  }
  func.func @transform_5(%arg0: i32) -> (i32, i32) {
    %c0_i32 = arith.constant 0 : i32
    %c0_i32_0 = arith.constant 0 : i32
    %c0_i32_1 = arith.constant 0 : i32
    return %c0_i32, %c0_i32_0 : i32, i32
  }
  func.func @transform_6(%arg0: i32) -> (i32, i32) {
    %c0_i32 = arith.constant 0 : i32
    %c0_i32_0 = arith.constant 0 : i32
    %c0_i32_1 = arith.constant 0 : i32
    return %c0_i32, %c0_i32_0 : i32, i32
  }
  func.func @transform_7(%arg0: i32) -> (i32, i32) {
    %c0_i32 = arith.constant 0 : i32
    %c0_i32_0 = arith.constant 0 : i32
    %c0_i32_1 = arith.constant 0 : i32
    return %c0_i32, %c0_i32_0 : i32, i32
  }
  func.func @transform_8(%arg0: i32) -> (i32, i32) {
    %c0_i32 = arith.constant 0 : i32
    %c0_i32_0 = arith.constant 0 : i32
    %c0_i32_1 = arith.constant 0 : i32
    return %c0_i32, %c0_i32_0 : i32, i32
  }
  func.func @transform_9(%arg0: i32) -> (i32, i32) {
    %c0_i32 = arith.constant 0 : i32
    %c0_i32_0 = arith.constant 0 : i32
    return %arg0, %c0_i32 : i32, i32
  }
}

</mosaic_0001>

<bundles_post_ra>
// kernel: tpu_custom_call.1
= control target key start
LH: loop header
LB: loop body
LE: loop exit
PB: predicated region body
PF: predicated region fallthrough
CT: control target
= control target key end

     0   :  { %14 = vsyncpa [#allocation3], 0  ;;  %s982_s0 = inlined_call_operand.vmem [shape: f32[2,16], index: 0, kind: input, shape index: {}]   ;;  %s983_s1 = inlined_call_operand.hbm [shape: f32[16,32], index: 1, kind: input, shape index: {}]   ;;  %s984_s2 = inlined_call_operand.vmem [shape: f32[1,32], index: 2, kind: input, shape index: {}]   ;;  %s985_s3 = inlined_call_operand.vmem [shape: f32[32,32], index: 3, kind: input, shape index: {}]   ;;  %s986_s4 = inlined_call_operand.vmem [shape: f32[1,32], index: 4, kind: input, shape index: {}]   ;;  %s987_s5 = inlined_call_operand.hbm [shape: f32[32,32], index: 5, kind: input, shape index: {}]   ;;  %s988_s6 = inlined_call_operand.vmem [shape: f32[1,32], index: 6, kind: input, shape index: {}]   ;;  %s989_s7 = inlined_call_operand.vmem [shape: f32[32,4], index: 7, kind: input, shape index: {}]   ;;  %s990_s8 = inlined_call_operand.vmem [shape: f32[4,32], index: 8, kind: input, shape index: {}]   ;;  %s991_s9 = inlined_call_operand.hbm [shape: f32[2,32], index: 9, kind: output, shape index: {}]  }
   0x1   :  { %15 = vsyncpa [#allocation6], 0 }
   0x2   :  { %16 = vsyncpa [#allocation4], 0  ;;  %s817_s30 = smov [#allocation2]   ;;  %s745_s13 = scalar_lea.hbm %s983_s1, 256 }
   0x3   :  { %s24_s10 = sshll.u32 %s817_s30, 4  ;;  %p746_p0 = scmp.ne.s32.totalorder %s983_s1, %s745_s13  ;;  %s25_s10 = int_to_ptr.vmem [resolvable:$true] %s24_s10 }
   0x4   :  { %p749_p1 = scmp.lt.u32.totalorder %s745_s13, %s983_s1 }
   0x6   :  { %p751_p2 = pnand %p749_p1, %p746_p0 }
   0x8   :  { %754 = shalt.err (!%p751_p2)
}
   0x9   :  { %s755_s18 = scalar_lea.vmem %s25_s10, 256  ;;  %p760_p4 = scmp.lt.s32.totalorder %s25_s10, %s25_s10 }
   0xa   :  { %p756_p3 = scmp.ne.s32.totalorder %s25_s10, %s755_s18  ;;  %p761_p5 = scmp.lt.s32.totalorder %s755_s18, %s755_s18 }
   0xc   :  { %p762_p6 = por %p761_p5, %p760_p4 }
   0xe   :  { %p763_p7 = pnand %p762_p6, %p756_p3 }
  0x10   :  { %766 = shalt.err (!%p763_p7)
}
  0x11   :  { %s818_s19 = smov 128   ;;  %s819_s20 = smov 8  }
  0x12   :  { %30 = dma.hbm_to_vmem [thread:$0]  %s983_s1, 256, %s25_s10, [#allocation3], %s818_s19, %s818_s19, %s819_s20  }
  0x13   :  { %s820_s23 = smov [#allocation5]   ;;  %s767_s27 = scalar_lea.hbm %s987_s5, 512 }
  0x14   :  { %s42_s24 = sshll.u32 %s820_s23, 4  ;;  %p768_p8 = scmp.ne.s32.totalorder %s987_s5, %s767_s27  ;;  %s43_s24 = int_to_ptr.vmem [resolvable:$true] %s42_s24 }
  0x15   :  { %p771_p9 = scmp.lt.u32.totalorder %s767_s27, %s987_s5 }
  0x17   :  { %p773_p10 = pnand %p771_p9, %p768_p8 }
  0x19   :  { %776 = shalt.err (!%p773_p10)
}
  0x1a   :  { %s777_s12 = scalar_lea.vmem %s43_s24, 512  ;;  %p782_p12 = scmp.lt.s32.totalorder %s43_s24, %s43_s24 }
  0x1b   :  { %p778_p11 = scmp.ne.s32.totalorder %s43_s24, %s777_s12  ;;  %p783_p13 = scmp.lt.s32.totalorder %s777_s12, %s777_s12 }
  0x1d   :  { %p784_p0 = por %p783_p13, %p782_p12 }
  0x1f   :  { %p785_p1 = pnand %p784_p0, %p778_p11 }
  0x21   :  { %788 = shalt.err (!%p785_p1)
}
  0x22   :  { %48 = dma.hbm_to_vmem [thread:$0]  %s987_s5, 512, %s43_s24, [#allocation6], %s818_s19, %s818_s19, %s819_s20  }
  0x23   :  { %811 = dma.done.wait [#allocation3], 256  }
  0x24   :  { %812 = vsyncadd [#allocation3], 4294967040 }
  0x25   :  { %813 = dma.done.wait [#allocation6], 512  }
  0x26   :  { %814 = vsyncadd [#allocation6], 4294966784  ;;  %v821_v0 = vmov 0.0|0.0   ;;  %vm822_vm0 = vmmov 0   ;;  %v823_v1 = vmov 0.0   ;;  %v62_v2 = vld [vmem:[#allocation2] sm:$0xff]  ;;  %v330_v32 = vlaneseq }
  0x27   :  { %707 = vmatprep.subr.bf16.mxu0 %v821_v0  ;;  %661 = vmatprep.mubr.msk.f32.mxu0 %vm822_vm0, %v823_v1  ;;  %v63_v3 = vld [vmem:[#allocation2 + $0x8] sm:$0xff]  ;;  %v146_v5 = vld [vmem:[%s985_s3] sm:$0xff]  ;;  %vm71_vm1 = vcmask 130048   ;;  %v148_v9 = vld [vmem:[%s985_s3 + $0x10] sm:$0xff]  ;;  %vm157_vm2 = vcmask 261120   ;;  %s824_s25 = smov 104  }
  0x28   :  { %710 = vmatprep.subr.bf16.mxu1 %v821_v0  ;;  %672 = vmatprep.mubr.msk.f32.mxu1 %vm822_vm0, %v823_v1  ;;  %v708_v4 = vpack.c.bf16 %v63_v3, %v62_v2  ;;  %v147_v6 = vld [vmem:[%s985_s3 + $0x8] sm:$0xff]  ;;  %v61_v8 = vld [vmem:[%s982_s0] sm:$0x3]  ;;  %v149_v10 = vld [vmem:[%s985_s3 + $0x18] sm:$0xff]  ;;  %v331_v33 = vshrl.u32 %v330_v32, 7  ;;  %v362_v34 = vand.u32 127, %v330_v32 }
  0x29   :  { %v711_v7 = vpack.c.bf16 %v147_v6, %v146_v5  ;;  %v714_v11 = vpack.c.bf16 %v149_v10, %v148_v9  ;;  %v232_v12 = vld [vmem:[#allocation5] sm:$0xff]  ;;  %v233_v13 = vld [vmem:[#allocation5 + $0x8] sm:$0xff]  ;;  %v624_v15 = vld [vmem:[%s984_s2] ss:$0 sm:$0xff]  ;;  %s826_s26 = smov 112   ;;  %vm351_vm3 = vcmask 60416  }
  0x2a   :  { %709 = vmatpush3.bf16.msra.mxu0 %v708_v4  ;;  %v717_v14 = vpack.c.bf16 %v233_v13, %v232_v12  ;;  %v234_v20 = vld [vmem:[#allocation5 + $0x10] sm:$0xff]  ;;  %v235_v21 = vld [vmem:[#allocation5 + $0x18] sm:$0xff]  ;;  %v365_v35 = vsub.s32 %v362_v34, %v331_v33  ;;  %v827_v36 = vmov 1983009808   ;;  %v828_v39 = vmov 1934713408  }
  0x2b   :  { %712 = vmatpush3.bf16.msra.mxu1 %v711_v7  ;;  %716 = vmatprep.subr.bf16.mxu0 %v821_v0  ;;  %v720_v22 = vpack.c.bf16 %v235_v21, %v234_v20  ;;  %v626_v23 = vld [vmem:[%s986_s4] ss:$0 sm:$0xff]  ;;  %s825_s4 = smov 120   ;;  %v328_v37 = vunpack.c.l.s4 %v827_v36  ;;  %v344_v40 = vunpack.c.l.s4 %v828_v39  ;;  %vm376_vm4 = vcmask 1043456   ;;  %v454_v63 = vld [vmem:[%s989_s7 + $0x8] sm:$0xff]  ;;  %v455_v2 = vld [vmem:[%s989_s7 + $0x10] sm:$0xff] }
  0x2c   :  { %713 = vmatprep.subr.bf16.mxu1 %v821_v0  ;;  %v628_v28 = vld [vmem:[%s988_s6] ss:$0 sm:$0xff]  ;;  %vm371_vm5 = vcmask 1041409   ;;  %vm373_vm6 = vcmask 31744   ;;  %v456_v4 = vld [vmem:[%s989_s7 + $0x18] sm:$0xff]  ;;  %vm606_vm7 = vcmask 254976  }
  0x2d   :  { %662 = vmatmul.mubr.msk.f32.vlgmr.msra.gmra.mrb[0].mxu0 %vm71_vm1, %v61_v8  ;;  %v329_v38 = vunpack.c.0.s8 %v328_v37  ;;  %v345_v45 = vunpack.c.0.s8 %v344_v40  ;;  %v358_v56 = vld [vmem:[%s990_s8] sm:$0xf]  ;;  %v726_v5 = vpack.c.bf16 %v456_v4, %v455_v2 }
  0x2e   :  { %683 = vmatprep.mubr.msk.f32.mxu0 %vm822_vm0, %v823_v1  ;;  %718 = vmatpush3.bf16.msra.mxu0 %v717_v14  ;;  %v453_v62 = vld [vmem:[%s989_s7] sm:$0xff]  ;;  %s829_s7 = smov [#allocation7]  }
  0x2f   :  { %715 = vmatpush3.bf16.msra.mxu1 %v714_v11  ;;  %719 = vmatprep.subr.bf16.mxu0 %v821_v0  ;;  %v332_v43 = vsub.s32 %v329_v38, %v331_v33  ;;  %v348_v50 = vsub.s32 %v345_v45, %v331_v33  ;;  %v723_v3 = vpack.c.bf16 %v454_v63, %v453_v62  ;;  %s614_s5 = sshll.u32 %s829_s7, 4  ;;  %s615_s5 = int_to_ptr.vmem [resolvable:$true] %s614_s5 }
  0x30   :  { %686 = vmatprep.subr.mxu1 %v823_v1  ;;  %s789_s13 = scalar_lea.vmem %s615_s5, 32  ;;  %p794_p3 = scmp.lt.s32.totalorder %s615_s5, %s615_s5 }
  0x31   :  { %p790_p2 = scmp.ne.s32.totalorder %s615_s5, %s789_s13  ;;  %p795_p4 = scmp.lt.s32.totalorder %s789_s13, %s789_s13 }
  0x32   :  { %721 = vmatpush3.bf16.msra.mxu0 %v720_v22 }
  0x33   :  { %722 = vmatprep.subr.bf16.mxu0 %v821_v0  ;;  %p796_p5 = por %p795_p4, %p794_p3 }
  0x35   :  { %p797_p6 = pnand %p796_p5, %p790_p2 }
 0x100   :  { %v141_v16 = vpop.f32.mrb[0].mxu0 }
 0x101   :  { %v142_v17 = vadd.f32 %v624_v15, %v141_v16  ;;  %v663_v18 = vpop.f32.mrb[1].mxu0 }
 0x103   :  { %v145_v19 = vmax.f32 %v142_v17, 0.0 }
 0x105   :  { %673 = vmatmul.mubr.msk.f32.vlgmr.msra.gmra.mrb[0].mxu1 %vm157_vm2, %v145_v19 }
 0x106   :  { %688 = vmatprep.mubr.msk.f32.mxu1 %vm822_vm0, %v823_v1  ;;  %687 = vmatpush3.msk.msra.mxu1 %vm376_vm4, %v358_v56 }
 0x107   :  { %702 = vmatprep.subr.mxu1 %v823_v1 }
 0x1d8   :  { %v227_v24 = vpop.f32.mrb[0].mxu1 }
 0x1d9   :  { %v228_v25 = vadd.f32 %v626_v23, %v227_v24  ;;  %v674_v26 = vpop.f32.mrb[1].mxu1 }
 0x1db   :  { %v231_v27 = vmax.f32 %v228_v25, 0.0 }
 0x1dd   :  { %684 = vmatmul.mubr.msk.f32.vlgmr.msra.gmra.mrb[2].mxu0 %vm157_vm2, %v231_v27 }
 0x1de   :  { %699 = vmatprep.mubr.msk.f32.mxu0 %vm822_vm0, %v823_v1  ;;  %724 = vmatpush3.bf16.msra.mxu0 %v723_v3 }
 0x1df   :  { %725 = vmatprep.subr.bf16.mxu0 %v821_v0 }
 0x1e2   :  { %727 = vmatpush3.bf16.msra.mxu0 %v726_v5 }
 0x2b0   :  { %v312_v29 = vpop.f32.mrb[2].mxu0 }
 0x2b1   :  { %v313_v30 = vadd.f32 %v628_v28, %v312_v29  ;;  %v685_v31 = vpop.f32.mrb[3].mxu0 }
 0x2b3   :  { %323 = vrot.lane.b32.xlu1 %v313_v30, %s824_s25  ;;  %317 = vrot.lane.b32.xlu0 %v313_v30, %s825_s4 }
 0x2b7   :  { %320 = vrot.lane.b32.xlu0 %v313_v30, %s826_s26 }
 0x325   :  { %v324_v41 = vpop.permute.xlu1 %323  ;;  %v318_v42 = vpop.permute.xlu0 %317 }
 0x326   :  { %v334_v44 = vcombine.low %v318_v42, %v324_v41 }
 0x328   :  { %v341_v48 = vrot.slane %v334_v44, %v332_v43 }
 0x329   :  { %v321_v46 = vpop.permute.xlu0 %320 }
 0x32a   :  { %v326_v47 = vcombine.low %v313_v30, %v321_v46 }
 0x32c   :  { %v333_v49 = vrot.slane %v326_v47, %v332_v43 }
 0x32e   :  { %v342_v51 = vcombine.low %v333_v49, %v341_v48 }
 0x330   :  { %v349_v52 = vrot.slane %v342_v51, %v348_v50 }
 0x332   :  { %v352_v53 = vsel %vm351_vm3, %v349_v52, -inf  ;;  %v350_v54 = vcombine.high %v349_v52, %v823_v1 }
 0x333   :  { %353 = vmax.xlane.f32.xlu1 %v352_v53 }
 0x334   :  { %v355_v55 = vsel %vm351_vm3, %v350_v54, -inf }
 0x335   :  { %356 = vmax.xlane.f32.xlu0 %v355_v55 }
 0x3c0   :  { %v354_v57 = vpop.xlane.xlu1 %353 }
 0x3c1   :  { %v366_v59 = vrot.slane %v354_v57, %v365_v35 }
 0x3c2   :  { %v357_v58 = vpop.xlane.xlu0 %356 }
 0x3c3   :  { %v370_v60 = vrot.slane %v357_v58, %v365_v35 }
 0x3c5   :  { %v372_v61 = vsel %vm371_vm5, %v370_v60, %v366_v59 }
 0x3c6   :  { %689 = vmatmul.mubr.msk.f32.vlgmr.msra.gmra.mrb[2].mxu1 %vm373_vm6, %v372_v61 }
 0x3c7   :  { %703 = vmatpush3.msk.msra.mxu1 %vm376_vm4, %v358_v56  ;;  %704 = vmatprep.mubr.msk.f32.mxu1 %vm822_vm0, %v823_v1 }
 0x499   :  { %v446_v1 = vpop.f32.mrb[2].mxu1 }
 0x49a   :  { %v450_v6 = vsub.f32 %v313_v30, %v446_v1  ;;  %v690_v7 = vpop.f32.mrb[3].mxu1 }
 0x49c   :  { %v451_v8 = vmul.f32 1.442695, %v450_v6 }
 0x49e   :  { %741 = vpow2.f32 %v451_v8 }
 0x4a8   :  { %v742_v9 = vpop.eup %741 }
 0x4a9   :  { %700 = vmatmul.mubr.msk.f32.vlgmr.msra.gmra.mrb[4].mxu0 %vm157_vm2, %v742_v9 }
 0x57c   :  { %v526_v10 = vpop.f32.mrb[4].mxu0 }
 0x57d   :  { %743 = vrcp.f32 %v526_v10  ;;  %v701_v11 = vpop.f32.mrb[5].mxu0 }
 0x587   :  { %v744_v12 = vpop.eup %743 }
 0x588   :  { %705 = vmatmul.mubr.msk.f32.vlgmr.msra.gmra.mrb[4].mxu1 %vm373_vm6, %v744_v12 }
 0x65b   :  { %v601_v13 = vpop.f32.mrb[4].mxu1 }
 0x65c   :  { %v605_v0 = vmul.f32 %v742_v9, %v601_v13  ;;  %v706_v14 = vpop.f32.mrb[5].mxu1 }
 0x65e   :  { %607 = vst.msk [vmem:[#allocation7] sm:$0x3] %vm606_vm7, %v605_v0 }
 0x65f   :  { %800 = shalt.err (!%p797_p6)
}
 0x660   :  { %s801_s16 = scalar_lea.hbm %s991_s9, 32 }
 0x661   :  { %p802_p7 = scmp.ne.s32.totalorder %s991_s9, %s801_s16  ;;  %p805_p8 = scmp.lt.u32.totalorder %s801_s16, %s991_s9 }
 0x663   :  { %p807_p9 = pnand %p805_p8, %p802_p7 }
 0x665   :  { %810 = shalt.err (!%p807_p9)
}
 0x666   :  { %617 = dma.vmem_to_hbm [thread:$0]  %s615_s5, 32, %s991_s9, [#allocation4]  }
 0x667   :  { %815 = dma.done.wait [#allocation4], 32  }
 0x668   :  { %816 = vsyncadd [#allocation4], 4294967264 }
 0x669   :  { %621 = vsyncpa [#allocation3], 1 }
 0x66a   :  { %622 = vsyncpa [#allocation6], 1 }
 0x66b   :  { %623 = vsyncpa [#allocation4], 1 }

</bundles_post_ra>
